<compile_context>
chip_gen: v5e
topology: v5e:2x2
jax: 0.10.0
libtpu: 0.0.40
codegen_flags: <defaults>
</compile_context>

<pallas_src>
import functools
import numpy as np
import jax
import jax.numpy as jnp
from jax.experimental import pallas as pl
from jax.experimental.pallas import tpu as pltpu


# ----------------------------------------------------------------------------
# Helpers
# ----------------------------------------------------------------------------
def _round_up(x, m):
    return (x + m - 1) // m * m


def _pick_tile(dim, candidates):
    for c in candidates:
        if dim >= c and dim % c == 0:
            return c
    return dim


def _row_tile(m):
    for c in (256, 128, 64, 32, 16, 8):
        if m % c == 0:
            return c
    return m


def _tc_per_chip():
    """Number of TensorCores per chip (2 on v7x) -> split N for tiny-M matmuls."""
    try:
        d = jax.devices()[0]
        nc = getattr(d, "num_cores", None)
        if isinstance(nc, int) and nc > 0:
            return nc
        if "v7" in str(getattr(d, "device_kind", "")).lower():
            return 2
    except Exception:
        pass
    return 1


_NUM_TC = _tc_per_chip()
_VMEM_LIMIT = 32 * 1024 * 1024          # raised above the v5e 16 MiB default
_SINGLE_K_BUDGET = 20 * 1024 * 1024     # double-buffered resident-block budget


# ----------------------------------------------------------------------------
# Fused matmul: out = act(A @ W + b [+ residual])
#   A: (Mp, Kp) bf16   W: (Kp, Np) bf16 (pre-padded)   b: (1, Np) f32
#   residual: (Mp, Np) bf16 or None                    out: (Mp, Np) out_dtype
# ----------------------------------------------------------------------------
def _mm_single_k(A, W, b, residual, activation, out_dtype, tm, tn):
    """Whole-K single-step matmul: no accumulator scratch, no k-loop."""
    Mp, Kp = A.shape
    _, Np = W.shape
    with_res = residual is not None

    def kernel(*refs):
        if with_res:
            a_ref, w_ref, b_ref, r_ref, o_ref = refs
        else:
            a_ref, w_ref, b_ref, o_ref = refs
            r_ref = None
        acc = jnp.dot(a_ref[...], w_ref[...], preferred_element_type=jnp.float32)
        acc = acc + b_ref[...]
        if with_res:
            acc = acc + r_ref[...].astype(jnp.float32)
        if activation == "relu":
            acc = jnp.maximum(acc, 0.0)
        elif activation == "sigmoid":
            acc = jax.nn.sigmoid(acc)
        o_ref[...] = acc.astype(o_ref.dtype)

    in_specs = [
        pl.BlockSpec((tm, Kp), lambda i, j: (i, 0)),
        pl.BlockSpec((Kp, tn), lambda i, j: (0, j)),
        pl.BlockSpec((1, tn), lambda i, j: (0, j)),
    ]
    args = [A, W, b]
    if with_res:
        in_specs.append(pl.BlockSpec((tm, tn), lambda i, j: (i, j)))
        args.append(residual)

    out_itemsize = jnp.dtype(out_dtype).itemsize
    ce = pl.CostEstimate(
        flops=2 * Mp * Kp * Np,
        transcendentals=Mp * Np if activation == "sigmoid" else 0,
        bytes_accessed=(Mp * Kp * 2 + Kp * Np * 2 + Np * 4
                        + (Mp * Np * 2 if with_res else 0)
                        + Mp * Np * out_itemsize))

    return pl.pallas_call(
        kernel,
        out_shape=jax.ShapeDtypeStruct((Mp, Np), out_dtype),
        grid_spec=pltpu.PrefetchScalarGridSpec(
            num_scalar_prefetch=0,
            grid=(Mp // tm, Np // tn),
            in_specs=in_specs,
            out_specs=pl.BlockSpec((tm, tn), lambda i, j: (i, j)),
        ),
        compiler_params=pltpu.CompilerParams(
            dimension_semantics=("parallel", "parallel"),
            vmem_limit_bytes=_VMEM_LIMIT),
        cost_estimate=ce,
    )(*args)


def _mm_k_tiled(A, W, b, residual, activation, out_dtype, tm, tn, tk):
    """Fallback K-looped matmul (only used if blocks would not fit VMEM)."""
    Mp, Kp = A.shape
    _, Np = W.shape
    with_res = residual is not None

    def kernel(*refs):
        if with_res:
            a_ref, w_ref, b_ref, r_ref, o_ref, acc_ref = refs
        else:
            a_ref, w_ref, b_ref, o_ref, acc_ref = refs
            r_ref = None

        @pl.when(pl.program_id(2) == 0)
        def _():
            acc_ref[...] = jnp.zeros_like(acc_ref)

        acc_ref[...] += jnp.dot(a_ref[...], w_ref[...],
                                preferred_element_type=jnp.float32)

        @pl.when(pl.program_id(2) == pl.num_programs(2) - 1)
        def _():
            r = acc_ref[...] + b_ref[...]
            if with_res:
                r = r + r_ref[...].astype(jnp.float32)
            if activation == "relu":
                r = jnp.maximum(r, 0.0)
            elif activation == "sigmoid":
                r = jax.nn.sigmoid(r)
            o_ref[...] = r.astype(o_ref.dtype)

    in_specs = [
        pl.BlockSpec((tm, tk), lambda i, j, k: (i, k)),
        pl.BlockSpec((tk, tn), lambda i, j, k: (k, j)),
        pl.BlockSpec((1, tn), lambda i, j, k: (0, j)),
    ]
    args = [A, W, b]
    if with_res:
        in_specs.append(pl.BlockSpec((tm, tn), lambda i, j, k: (i, j)))
        args.append(residual)

    return pl.pallas_call(
        kernel,
        out_shape=jax.ShapeDtypeStruct((Mp, Np), out_dtype),
        grid_spec=pltpu.PrefetchScalarGridSpec(
            num_scalar_prefetch=0,
            grid=(Mp // tm, Np // tn, Kp // tk),
            in_specs=in_specs,
            out_specs=pl.BlockSpec((tm, tn), lambda i, j, k: (i, j)),
            scratch_shapes=[pltpu.VMEM((tm, tn), jnp.float32)],
        ),
        compiler_params=pltpu.CompilerParams(
            dimension_semantics=("parallel", "parallel", "arbitrary"),
            vmem_limit_bytes=_VMEM_LIMIT),
    )(*args)


def _mm_pallas(A, W, b, residual, activation, out_dtype):
    Mp, Kp = A.shape
    _, Np = W.shape
    with_res = residual is not None

    tm = _pick_tile(Mp, (256, 128, 64, 32, 16))
    # If the M grid collapses to one tile (tiny backbone layers 3/4), split N in
    # two on multi-TensorCore chips so both cores get work; otherwise whole N.
    tn = Np
    if Mp == tm and _NUM_TC >= 2 and Np >= 256 and Np % 256 == 0:
        tn = Np // 2

    # Double-buffered resident-block VMEM estimate for the single-K path.
    est = 2 * ((tm * Kp + Kp * tn) * 2 + tm * tn * 4
               + (tm * tn * 2 if with_res else 0) + tn * 4)
    if est <= _SINGLE_K_BUDGET:
        return _mm_single_k(A, W, b, residual, activation, out_dtype, tm, tn)

    tk = _pick_tile(Kp, (2048, 1024, 512, 256, 128))
    return _mm_k_tiled(A, W, b, residual, activation, out_dtype, tm, tn, tk)


@functools.partial(jax.jit, static_argnames=(
    "kh", "kw", "cout", "stride", "padding", "activation", "out_dtype"))
def conv2d(x, w, b, residual, *, kh, kw, cout, stride, padding, activation,
           out_dtype):
    """x: (N,H,W,Cin) bf16/f32.  w: (Kp,Np) bf16 pre-padded.  b: (1,Np) f32.
    residual (optional): (N,Ho,Wo,cout) fused into the matmul epilogue."""
    N, H, W_, Cin = x.shape
    K = kh * kw * Cin
    Ho = (H + 2 * padding - kh) // stride + 1
    Wo = (W_ + 2 * padding - kw) // stride + 1
    M = N * Ho * Wo
    Kp, Np = w.shape
    Mp = _round_up(M, 16)

    xb = x.astype(jnp.bfloat16)
    # TODO(synk): fold the kh*kw taps into the matmul K-grid with manual DMA
    # from the padded NHWC input instead of materializing im2col patches.
    if kh == 1 and kw == 1 and stride == 1:
        A = xb.reshape(M, Cin)
    else:
        xp = jnp.pad(xb, ((0, 0), (padding, padding), (padding, padding), (0, 0)))
        cols = [xp[:, di:di + stride * Ho:stride, dj:dj + stride * Wo:stride, :]
                for di in range(kh) for dj in range(kw)]
        patches = jnp.concatenate(cols, axis=-1) if len(cols) > 1 else cols[0]
        A = patches.reshape(M, K)
    if (Mp, Kp) != (M, K):
        # K-padding columns must stay zero: they multiply the padded weight rows.
        A = jnp.pad(A, ((0, Mp - M), (0, Kp - K)))

    R = None
    if residual is not None:
        R = residual.reshape(M, cout).astype(jnp.bfloat16)
        if (Mp, Np) != (M, cout):
            R = jnp.pad(R, ((0, Mp - M), (0, Np - cout)))

    out = _mm_pallas(A, w, b, R, activation, out_dtype)
    if (Mp, Np) != (M, cout):
        out = out[:M, :cout]
    return out.reshape(N, Ho, Wo, cout)


def apply_conv(x, p, *, stride=1, padding=0, activation=None, residual=None,
               out_dtype=jnp.bfloat16):
    return conv2d(x, p["w"], p["b"], residual,
                  kh=p["kh"], kw=p["kw"], cout=p["cout"],
                  stride=stride, padding=padding, activation=activation,
                  out_dtype=out_dtype)


# ----------------------------------------------------------------------------
# MaxPool 3x3 / stride 2 / pad 1: 9-input elementwise-max kernel (row-tiled)
# ----------------------------------------------------------------------------
@jax.jit
def maxpool3x3s2p1(x):
    N, H, W, C = x.shape
    Ho = (H + 2 - 3) // 2 + 1
    Wo = (W + 2 - 3) // 2 + 1
    xp = jnp.pad(x, ((0, 0), (1, 1), (1, 1), (0, 0)), constant_values=-jnp.inf)
    # TODO(synk): fuse the 9-tap extraction into the kernel (row-band DMA) to
    # avoid materializing the strided slices in XLA.
    taps = [xp[:, di:di + 2 * Ho:2, dj:dj + 2 * Wo:2, :].reshape(N * Ho, Wo * C)
            for di in range(3) for dj in range(3)]
    M, L = N * Ho, Wo * C
    tr = _row_tile(M)

    def kernel(*refs):
        o_ref = refs[-1]
        m = refs[0][...]
        for r in refs[1:-1]:
            m = jnp.maximum(m, r[...])
        o_ref[...] = m

    out = pl.pallas_call(
        kernel,
        out_shape=jax.ShapeDtypeStruct((M, L), x.dtype),
        grid=(M // tr,),
        in_specs=[pl.BlockSpec((tr, L), lambda i: (i, 0)) for _ in range(9)],
        out_specs=pl.BlockSpec((tr, L), lambda i: (i, 0)),
        compiler_params=pltpu.CompilerParams(
            dimension_semantics=("parallel",),
            vmem_limit_bytes=_VMEM_LIMIT),
    )(*taps)
    return out.reshape(N, Ho, Wo, C)


# ----------------------------------------------------------------------------
# Bilinear resize (align_corners=False) as lane-dense VPU blend kernels.
# W-blend first (so intermediates are lane-dense even for C=1), then H-blend
# with the lateral "+ add" fused into the final blend.
# ----------------------------------------------------------------------------
def _interp_1d(out_size, in_size):
    dst = np.arange(out_size, dtype=np.float64)
    src = np.maximum((dst + 0.5) * (in_size / out_size) - 0.5, 0.0)
    i0 = np.minimum(np.floor(src).astype(np.int64), in_size - 1).astype(np.int32)
    i1 = np.minimum(i0 + 1, in_size - 1).astype(np.int32)
    w1 = (src - i0).astype(np.float32)
    w0 = (1.0 - w1).astype(np.float32)
    return i0, i1, w0, w1


def _blend(a, b, w0, w1, add, out_dtype):
    """out = w0*a + w1*b [+ add]; computed in f32, written as out_dtype.
    w0/w1 broadcast as (M,1) row weights or (1,L) lane weights."""
    M, L = a.shape
    tr = _row_tile(M)
    with_add = add is not None

    def row_spec(arr):
        if arr.shape[0] == M:
            cols = arr.shape[1]
            return pl.BlockSpec((tr, cols), lambda i: (i, 0))
        return pl.BlockSpec((arr.shape[0], arr.shape[1]), lambda i: (0, 0))

    def kernel(*refs):
        if with_add:
            a_ref, b_ref, w0_ref, w1_ref, r_ref, o_ref = refs
        else:
            a_ref, b_ref, w0_ref, w1_ref, o_ref = refs
            r_ref = None
        y = (w0_ref[...] * a_ref[...].astype(jnp.float32)
             + w1_ref[...] * b_ref[...].astype(jnp.float32))
        if with_add:
            y = y + r_ref[...].astype(jnp.float32)
        o_ref[...] = y.astype(o_ref.dtype)

    in_specs = [row_spec(a), row_spec(b), row_spec(w0), row_spec(w1)]
    args = [a, b, w0, w1]
    if with_add:
        in_specs.append(row_spec(add))
        args.append(add)

    return pl.pallas_call(
        kernel,
        out_shape=jax.ShapeDtypeStruct((M, L), out_dtype),
        grid=(M // tr,),
        in_specs=in_specs,
        out_specs=pl.BlockSpec((tr, L), lambda i: (i, 0)),
        compiler_params=pltpu.CompilerParams(
            dimension_semantics=("parallel",),
            vmem_limit_bytes=_VMEM_LIMIT),
    )(*args)


@functools.partial(jax.jit, static_argnames=("out_h", "out_w", "out_dtype"))
def bilinear_resize(x, add=None, *, out_h, out_w, out_dtype=jnp.bfloat16):
    """x: NHWC -> (N,out_h,out_w,C); matches F.interpolate(bilinear,
    align_corners=False).  If `add` is given, returns resize(x) + add."""
    N, H, W, C = x.shape
    i0h, i1h, w0h, w1h = _interp_1d(out_h, H)
    i0w, i1w, w0w, w1w = _interp_1d(out_w, W)

    # blend along W first (lane weights) -> lane-dense intermediate even if C=1
    a = jnp.take(x, jnp.asarray(i0w), axis=2).reshape(N * H, out_w * C)
    b = jnp.take(x, jnp.asarray(i1w), axis=2).reshape(N * H, out_w * C)
    ww0 = jnp.asarray(np.repeat(w0w, C)).reshape(1, out_w * C)
    ww1 = jnp.asarray(np.repeat(w1w, C)).reshape(1, out_w * C)
    y = _blend(a, b, ww0, ww1, None, jnp.float32).reshape(N, H, out_w, C)

    # blend along H (row weights), with optional fused lateral add
    a2 = jnp.take(y, jnp.asarray(i0h), axis=1).reshape(N * out_h, out_w * C)
    b2 = jnp.take(y, jnp.asarray(i1h), axis=1).reshape(N * out_h, out_w * C)
    wh0 = jnp.asarray(np.tile(w0h, N)).reshape(N * out_h, 1)
    wh1 = jnp.asarray(np.tile(w1h, N)).reshape(N * out_h, 1)
    add2 = None if add is None else add.reshape(N * out_h, out_w * C)
    z = _blend(a2, b2, wh0, wh1, add2, out_dtype)
    return z.reshape(N, out_h, out_w, C)


# ----------------------------------------------------------------------------
# Deterministic synthetic parameters (ResNet101 backbone + PAN head)
# Weights are BN-folded, reshaped/padded to matmul layout and cast to bf16.
# ----------------------------------------------------------------------------
_rng = np.random.RandomState(0)
_BN_EPS = 1e-5


def _pack_conv(w, b):
    kh, kw, cin, cout = w.shape
    K = kh * kw * cin
    Kp, Np = _round_up(K, 128), _round_up(cout, 128)
    Wm = np.zeros((Kp, Np), np.float32)
    Wm[:K, :cout] = w.reshape(K, cout)
    Bm = np.zeros((1, Np), np.float32)
    Bm[0, :cout] = b
    return {"w": jnp.asarray(Wm, jnp.bfloat16),
            "b": jnp.asarray(Bm, jnp.float32),
            "kh": kh, "kw": kw, "cout": cout}


def _conv_bn(kh, kw, cin, cout):
    """Conv (no bias) + eval-mode BatchNorm, exactly folded into (w, b)."""
    fan_in = kh * kw * cin
    w = _rng.normal(0.0, 0.5 / np.sqrt(fan_in),
                    (kh, kw, cin, cout)).astype(np.float32)
    gamma = _rng.uniform(0.5, 1.0, cout).astype(np.float32)
    beta = (0.01 * _rng.normal(0, 1, cout)).astype(np.float32)
    mean = (0.01 * _rng.normal(0, 1, cout)).astype(np.float32)
    var = _rng.uniform(0.5, 1.5, cout).astype(np.float32)
    scale = gamma / np.sqrt(var + _BN_EPS)
    return _pack_conv(w * scale, beta - mean * scale)


def _conv_bias(kh, kw, cin, cout):
    fan_in = kh * kw * cin
    w = _rng.normal(0.0, 1.0 / np.sqrt(fan_in),
                    (kh, kw, cin, cout)).astype(np.float32)
    b = (0.01 * _rng.normal(0, 1, cout)).astype(np.float32)
    return _pack_conv(w, b)


def _make_layer(cin, planes, blocks, stride):
    exp = 4
    layer = []
    blk = {"c1": _conv_bn(1, 1, cin, planes),
           "c2": _conv_bn(3, 3, planes, planes),
           "c3": _conv_bn(1, 1, planes, planes * exp),
           "stride": stride}
    if stride != 1 or cin != planes * exp:
        blk["down"] = _conv_bn(1, 1, cin, planes * exp)
    layer.append(blk)
    for _ in range(blocks - 1):
        layer.append({"c1": _conv_bn(1, 1, planes * exp, planes),
                      "c2": _conv_bn(3, 3, planes, planes),
                      "c3": _conv_bn(1, 1, planes, planes * exp),
                      "stride": 1})
    return layer


def make_pan_params(in_channels=3):
    p = {}
    p["conv1"] = _conv_bn(7, 7, in_channels, 64)           # layer0 conv + bn1
    p["layer1"] = _make_layer(64, 64, 3, 1)                 # ResNet101
    p["layer2"] = _make_layer(256, 128, 4, 2)
    p["layer3"] = _make_layer(512, 256, 23, 2)
    p["layer4"] = _make_layer(1024, 512, 3, 2)
    p["toplayer"] = _conv_bias(1, 1, 2048, 256)
    p["latlayer1"] = _conv_bias(1, 1, 1024, 256)
    p["latlayer2"] = _conv_bias(1, 1, 512, 256)
    p["latlayer3"] = _conv_bias(1, 1, 256, 256)
    for i in range(1, 10):
        p[f"smooth{i}"] = _conv_bias(3, 3, 256, 256)
    for i in range(1, 4):
        p[f"downlayer{i}"] = _conv_bias(3, 3, 256, 256)
    p["depth"] = _conv_bias(3, 3, 256, 1)
    return p


# ----------------------------------------------------------------------------
# Forward pass (mirrors PAN.forward)
# ----------------------------------------------------------------------------
def _bottleneck(x, blk):
    s = blk["stride"]
    out = apply_conv(x, blk["c1"], stride=1, padding=0, activation="relu")
    out = apply_conv(out, blk["c2"], stride=s, padding=1, activation="relu")
    if "down" in blk:
        ident = apply_conv(x, blk["down"], stride=s, padding=0)
    else:
        ident = x
    # residual add + ReLU fused into the c3 matmul epilogue
    return apply_conv(out, blk["c3"], stride=1, padding=0, activation="relu",
                      residual=ident)


def _run_layer(x, layer):
    for blk in layer:
        x = _bottleneck(x, blk)
    return x


def pan_forward(params, x_nchw):
    x = jnp.transpose(x_nchw, (0, 2, 3, 1))  # NCHW -> NHWC

    c1 = apply_conv(x, params["conv1"], stride=2, padding=3, activation="relu")
    c1 = maxpool3x3s2p1(c1)
    c2 = _run_layer(c1, params["layer1"])
    c3 = _run_layer(c2, params["layer2"])
    c4 = _run_layer(c3, params["layer3"])
    c5 = _run_layer(c4, params["layer4"])

    # top-down FPN: upsample + lateral add fused into the resize blend
    p5 = apply_conv(c5, params["toplayer"])
    lat4 = apply_conv(c4, params["latlayer1"])
    p4 = bilinear_resize(p5, lat4, out_h=c4.shape[1], out_w=c4.shape[2])
    p4 = apply_conv(p4, params["smooth1"], padding=1)
    lat3 = apply_conv(c3, params["latlayer2"])
    p3 = bilinear_resize(p4, lat3, out_h=c3.shape[1], out_w=c3.shape[2])
    p3 = apply_conv(p3, params["smooth2"], padding=1)
    lat2 = apply_conv(c2, params["latlayer3"])
    p2 = bilinear_resize(p3, lat2, out_h=c2.shape[1], out_w=c2.shape[2])
    p2 = apply_conv(p2, params["smooth3"], padding=1)

    # bottom-up path: p_k + downconv(n_{k-1}) fused as matmul residual
    n2 = p2
    n3 = apply_conv(n2, params["downlayer1"], stride=2, padding=1, residual=p3)
    n3 = apply_conv(n3, params["smooth4"], padding=1)
    n4 = apply_conv(n3, params["downlayer2"], stride=2, padding=1, residual=p4)
    n4 = apply_conv(n4, params["smooth5"], padding=1)
    n5 = apply_conv(n4, params["downlayer3"], stride=2, padding=1, residual=p5)
    n5 = apply_conv(n5, params["smooth6"], padding=1)

    m5 = n5
    m4 = bilinear_resize(m5, n4, out_h=n4.shape[1], out_w=n4.shape[2])
    m4 = apply_conv(m4, params["smooth7"], padding=1)
    m3 = bilinear_resize(m4, n3, out_h=n3.shape[1], out_w=n3.shape[2])
    m3 = apply_conv(m3, params["smooth8"], padding=1)
    m2 = bilinear_resize(m3, n2, out_h=n2.shape[1], out_w=n2.shape[2])
    m2 = apply_conv(m2, params["smooth9"], padding=1)

    # depth conv with sigmoid fused in the matmul epilogue (f32 head), then the
    # final lane-dense (W-blend first, C=1) resize to 256x256
    depth = apply_conv(m2, params["depth"], padding=1, activation="sigmoid",
                       out_dtype=jnp.float32)
    out = bilinear_resize(depth, out_h=256, out_w=256, out_dtype=jnp.float32)
    return jnp.transpose(out, (0, 3, 1, 2))  # NHWC -> NCHW


if __name__ == "__main__":
    params = make_pan_params(in_channels=3)
    x = jax.random.normal(jax.random.PRNGKey(0), (2, 3, 64, 64), jnp.float32)
    out = pan_forward(params, x)
    out = jax.block_until_ready(out)
    assert out.shape == (2, 1, 256, 256), out.shape
    print("KERNEL_OK")
</pallas_src>

<mosaic_0001>
module attributes {stable_mosaic.version = 11 : i64} {
  func.func @kernel(%arg0: i32, %arg1: i32, %arg2: memref<256x256xbf16, #tpu.memory_space<vmem>>, %arg3: memref<256x128xbf16, #tpu.memory_space<vmem>>, %arg4: memref<1x128xf32, #tpu.memory_space<vmem>>, %arg5: memref<256x128xbf16, #tpu.memory_space<vmem>>) attributes {dimension_semantics = [#tpu.dimension_semantics<parallel>, #tpu.dimension_semantics<parallel>], iteration_bounds = array<i64: 8, 1>, scalar_prefetch = 0 : i64, scratch_operands = 0 : i64, tpu.core_type = #tpu.core_type<tc>, window_params = [{transform_indices = @transform_0, window_bounds = array<i64: 256, 256>}, {transform_indices = @transform_1, window_bounds = array<i64: 256, 128>}, {transform_indices = @transform_2, window_bounds = array<i64: 1, 128>}, {transform_indices = @transform_3, window_bounds = array<i64: 256, 128>}]} {
    %c0 = arith.constant 0 : index
    %c0_0 = arith.constant 0 : index
    %0 = vector.load %arg2[%c0, %c0_0] : memref<256x256xbf16, #tpu.memory_space<vmem>>, vector<256x256xbf16>
    %c0_1 = arith.constant 0 : index
    %c0_2 = arith.constant 0 : index
    %1 = vector.load %arg3[%c0_1, %c0_2] : memref<256x128xbf16, #tpu.memory_space<vmem>>, vector<256x128xbf16>
    %cst = arith.constant dense<0.000000e+00> : vector<256x128xf32>
    %2 = tpu.matmul %0, %1, %cst {dimension_numbers = #tpu.dot_dimension_numbers<[1], [0], [0], [1], [0, 0, 1, 1], [], []>} : vector<256x256xbf16>, vector<256x128xbf16>, vector<256x128xf32> -> vector<256x128xf32>
    %c0_3 = arith.constant 0 : index
    %c0_4 = arith.constant 0 : index
    %3 = vector.load %arg4[%c0_3, %c0_4] : memref<1x128xf32, #tpu.memory_space<vmem>>, vector<1x128xf32>
    %4 = vector.broadcast %3 : vector<1x128xf32> to vector<256x128xf32>
    %5 = arith.addf %2, %4 : vector<256x128xf32>
    %cst_5 = arith.constant 0.000000e+00 : f32
    %6 = vector.broadcast %cst_5 : f32 to vector<256x128xf32>
    %7 = arith.maximumf %5, %6 : vector<256x128xf32>
    %8 = arith.truncf %7 : vector<256x128xf32> to vector<256x128xbf16>
    %c0_6 = arith.constant 0 : index
    %c0_7 = arith.constant 0 : index
    %9 = vector.load %arg5[%c0_6, %c0_7] : memref<256x128xbf16, #tpu.memory_space<vmem>>, vector<256x128xbf16>
    tpu.vector_store %arg5[%c0_6, %c0_7], %8 {strides = array<i32>} : memref<256x128xbf16, #tpu.memory_space<vmem>>, vector<256x128xbf16>,
    return
  }
  func.func @transform_0(%arg0: i32, %arg1: i32) -> (i32, i32) {
    %c0_i32 = arith.constant 0 : i32
    %c0_i32_0 = arith.constant 0 : i32
    return %arg0, %c0_i32 : i32, i32
  }
  func.func @transform_1(%arg0: i32, %arg1: i32) -> (i32, i32) {
    %c0_i32 = arith.constant 0 : i32
    %c0_i32_0 = arith.constant 0 : i32
    return %c0_i32, %arg1 : i32, i32
  }
  func.func @transform_2(%arg0: i32, %arg1: i32) -> (i32, i32) {
    %c0_i32 = arith.constant 0 : i32
    %c0_i32_0 = arith.constant 0 : i32
    return %c0_i32, %arg1 : i32, i32
  }
  func.func @transform_3(%arg0: i32, %arg1: i32) -> (i32, i32) {
    %c0_i32 = arith.constant 0 : i32
    return %arg0, %arg1 : i32, i32
  }
}

</mosaic_0001>

<bundles_post_ra>
// kernel: conv2d.1
= control target key start
LH: loop header
LB: loop body
LE: loop exit
PB: predicated region body
PF: predicated region fallthrough
CT: control target
= control target key end

     0   :  { %8 = vsyncpa [#allocation3], 0  ;;  %s1733_s0 = inlined_call_operand.vmem [shape: bf16[2048,256], index: 0, kind: input, shape index: {}]   ;;  %s1734_s1 = inlined_call_operand.vmem [shape: bf16[256,128], index: 1, kind: input, shape index: {}]   ;;  %s1735_s2 = inlined_call_operand.vmem [shape: f32[1,128], index: 2, kind: input, shape index: {}]   ;;  %s1736_s3 = inlined_call_operand.hbm [shape: bf16[2048,128], index: 3, kind: output, shape index: {}]  }
   0x1   :  { %10 = vsyncpa [#allocation3 + $0x1], 0  ;;  %s1463_s12 = smov 0   ;;  %s1465_s13 = smov 0  }
   0x2   :  { %s1467_s14 = smov 0   ;;  %s1469_s15 = smov 0  }
   0x3   :  { %s1471_s16 = smov 0   ;;  %s1473_s17 = smov 0  }
   0x4 LB: > { %s934_s18 = sadd.s32 4294967295, %s1439_s17   ;;  %s935_s19 = sadd.s32 4294967294, %s1439_s17   ;;  %s1439_s17 = sphi %s1473_s17, %s16_s17   ;;  %s1435_s16 = sphi %s1471_s16, %s1743_s16   ;;  %s1431_s15 = sphi %s1469_s15, %s1742_s15   ;;  %s1427_s14 = sphi %s1467_s14, %s1741_s14   ;;  %s1423_s13 = sphi %s1465_s13, %s1740_s13   ;;  %s1419_s12 = sphi %s1463_s12, %s1739_s12  }
   0x5   : > { %s28_s20 = sadd.s32 1, %s1435_s16  ;;  %s115_s21 = sadd.s32 1, %s1427_s14 }
   0x6   : > { %p30_p0 = scmp.ge.s32.totalorder %s28_s20, 8  ;;  %p125_p1 = scmp.ne.s32.totalorder %s1427_s14, %s1423_s13 }
   0x7   : > { %p126_p2 = scmp.eq.s32.totalorder %s934_s18, 7  ;;  %p131_p3 = scmp.ne.s32.totalorder %s1423_s13, %s1419_s12 }
   0x8   : > { %s1745_s20 = smov (%p30_p0, %s28_s20), 0  ;;  %p132_p5 = scmp.eq.s32.totalorder %s935_s19, 7 }
   0x9   : > { %p1503_p4 = por %p126_p2, %p125_p1  ;;  %s110_s23 = ssub.s32 %s1435_s16, %s1745_s20 }
   0xa   : > { %p940_p6 = scmp.ge.s32.totalorder %s1439_s17, 1  ;;  %p113_p7 = scmp.eq.s32.totalorder %s110_s23, 0 }
   0xb   : > { %p1510_p8 = por %p132_p5, %p131_p3  ;;  %p173_p9 = scmp.lt.s32.totalorder %s1439_s17, 9 }
   0xc   : > { %s1516_s25 = scalar_select %p113_p7, %s1427_s14, %s115_s21  }
   0xd   : > { %p174_p10 = pnand %p940_p6, %p173_p9 }
   0xe   : > { %s942_s11 = sshll.u32 (!%p174_p10), %s1431_s15, 5  ;;  %s202_s4 = sand.u32 (!%p174_p10), 1, %s1423_s13  }
   0xf   : > { %177 = sbr.rel (%p174_p10) target bundleno = 316 (0x13c), region = 32  ;;  %p206_p11 = scmp.lt.s32.totalorder (!%p174_p10), %s942_s11, 255 }
  0x10   : > { %s941_s5 = sshll.u32 (!%p174_p10), %s202_s4, 7  ;;  %s1381_s27 = scalar_lea.hbm (!%p174_p10), %s1736_s3, 1024 }
  0x11   : > { %s1648_s6 = scalar_lea.vmem (!%p174_p10), [#allocation2], %s941_s5 }
  0x12   : > { %s832_s18 = sshll.u32 (!%p174_p10), %s1648_s6, 4  ;;  %s833_s18 = int_to_ptr.vmem [resolvable:$true] %s832_s18 }
  0x14   : > { %v1182_v0 = vld [vmem:[%s1734_s1 + $0x38] sm:$0xff]  ;;  %v1181_v2 = vld [vmem:[%s1734_s1 + $0x30] sm:$0xff]  ;;  %v1180_v4 = vld [vmem:[%s1734_s1 + $0x28] sm:$0xff]  ;;  %s1747_s11 = smov (!%p206_p11, %s942_s11), 255 }
  0x15   : > { %v1190_v1 = vld [vmem:[%s1734_s1 + $0x78] sm:$0xff]  ;;  %544 = vmatpush.bf16.msra.mxu0 %v1182_v0  ;;  %1287 = vmatpush.bf16.msra.mxu2 %v1182_v0  ;;  %v1189_v3 = vld [vmem:[%s1734_s1 + $0x70] sm:$0xff]  ;;  %v1188_v5 = vld [vmem:[%s1734_s1 + $0x68] sm:$0xff]  ;;  %s1142_s7 = sshll.u32 %s1747_s11, 3 }
  0x16   : > { %633 = vmatpush.bf16.msra.mxu1 %v1190_v1  ;;  %1295 = vmatpush.bf16.msra.mxu3 %v1190_v1  ;;  %v1179_v6 = vld [vmem:[%s1734_s1 + $0x20] sm:$0xff]  ;;  %v1178_v8 = vld [vmem:[%s1734_s1 + $0x18] sm:$0xff]  ;;  %v1177_v10 = vld [vmem:[%s1734_s1 + $0x10] sm:$0xff]  ;;  %s1561_s19 = scalar_lea.vmem %s1733_s0, %s1142_s7  ;;  %s1191_s7 = sshll.u32 %s1431_s15, 7 }
  0x17   : > { %v1187_v7 = vld [vmem:[%s1734_s1 + $0x60] sm:$0xff]  ;;  %v1186_v9 = vld [vmem:[%s1734_s1 + $0x58] sm:$0xff]  ;;  %v1185_v11 = vld [vmem:[%s1734_s1 + $0x50] sm:$0xff]  ;;  %s831_s10 = scalar_lea.hbm %s1736_s3, %s1191_s7  ;;  %s819_s15 = scalar_lea.sflag [#allocation3], %s202_s4 }
  0x18   : > { %v1176_v12 = vld [vmem:[%s1734_s1 + $0x8] sm:$0xff]  ;;  %v1175_v14 = vld [vmem:[%s1734_s1] sm:$0xff]  ;;  %v955_v28 = vld [vmem:[%s1561_s19 + $0x10] sm:$0xf] }
  0x19   : > { %545 = vmatpush.bf16.msra.mxu0 %v1181_v2  ;;  %1288 = vmatpush.bf16.msra.mxu2 %v1181_v2  ;;  %v1184_v13 = vld [vmem:[%s1734_s1 + $0x48] sm:$0xff]  ;;  %v1183_v15 = vld [vmem:[%s1734_s1 + $0x40] sm:$0xff]  ;;  %v1146_v29 = vld [vmem:[%s1561_s19 + $0x14] sm:$0xf0] }
  0x1a   : > { %634 = vmatpush.bf16.msra.mxu1 %v1189_v3  ;;  %1296 = vmatpush.bf16.msra.mxu3 %v1189_v3  ;;  %v947_v16 = vld [vmem:[%s1561_s19] sm:$0xf]  ;;  %v1144_v17 = vld [vmem:[%s1561_s19 + $0x4] sm:$0xf0]  ;;  %v1143_v20 = vld [vmem:[%s1561_s19 + $0x4] sm:$0xf]  ;;  %v956_v36 = vor.u32 %v1146_v29, %v955_v28 }
  0x1b   : > { %v1011_v18 = vld [vmem:[%s1561_s19 + $0x80] sm:$0xf]  ;;  %v1160_v19 = vld [vmem:[%s1561_s19 + $0x84] sm:$0xf0]  ;;  %v949_v21 = vld [vmem:[%s1561_s19 + $0x8] sm:$0xf0]  ;;  %v948_v24 = vor.u32 %v1144_v17, %v947_v16 }
  0x1c   : > { %v1159_v22 = vld [vmem:[%s1561_s19 + $0x84] sm:$0xf]  ;;  %v1013_v23 = vld [vmem:[%s1561_s19 + $0x88] sm:$0xf0]  ;;  %v1012_v25 = vor.u32 %v1160_v19, %v1011_v18  ;;  %v952_v26 = vor.u32 %v1143_v20, %v949_v21  ;;  %v1019_v30 = vld [vmem:[%s1561_s19 + $0x90] sm:$0xf] }
  0x1d   : > { %546 = vmatpush.bf16.msra.mxu0 %v1180_v4  ;;  %1289 = vmatpush.bf16.msra.mxu2 %v1180_v4  ;;  %v1016_v27 = vor.u32 %v1159_v22, %v1013_v23  ;;  %v1162_v31 = vld [vmem:[%s1561_s19 + $0x94] sm:$0xf0]  ;;  %v1145_v32 = vld [vmem:[%s1561_s19 + $0x14] sm:$0xf]  ;;  %v957_v33 = vld [vmem:[%s1561_s19 + $0x18] sm:$0xf0] }
  0x1e   : > { %635 = vmatpush.bf16.msra.mxu1 %v1188_v5  ;;  %1297 = vmatpush.bf16.msra.mxu3 %v1188_v5  ;;  %v1161_v34 = vld [vmem:[%s1561_s19 + $0x94] sm:$0xf]  ;;  %v1021_v35 = vld [vmem:[%s1561_s19 + $0x98] sm:$0xf0]  ;;  %v1020_v37 = vor.u32 %v1162_v31, %v1019_v30  ;;  %v960_v38 = vor.u32 %v1145_v32, %v957_v33  ;;  %v963_v40 = vld [vmem:[%s1561_s19 + $0x20] sm:$0xf] }
  0x1f   : > { %v1024_v39 = vor.u32 %v1161_v34, %v1021_v35  ;;  %v1148_v41 = vld [vmem:[%s1561_s19 + $0x24] sm:$0xf0]  ;;  %v1027_v42 = vld [vmem:[%s1561_s19 + $0xa0] sm:$0xf]  ;;  %v1147_v44 = vld [vmem:[%s1561_s19 + $0x24] sm:$0xf] }
  0x20   : > { %v1164_v43 = vld [vmem:[%s1561_s19 + $0xa4] sm:$0xf0]  ;;  %v965_v45 = vld [vmem:[%s1561_s19 + $0x28] sm:$0xf0]  ;;  %v1163_v46 = vld [vmem:[%s1561_s19 + $0xa4] sm:$0xf]  ;;  %v964_v48 = vor.u32 %v1148_v41, %v963_v40 }
  0x21   : > { %547 = vmatpush.bf16.msra.mxu0 %v1179_v6  ;;  %1290 = vmatpush.bf16.msra.mxu2 %v1179_v6  ;;  %v1029_v47 = vld [vmem:[%s1561_s19 + $0xa8] sm:$0xf0]  ;;  %v1028_v49 = vor.u32 %v1164_v43, %v1027_v42  ;;  %v968_v50 = vor.u32 %v1147_v44, %v965_v45  ;;  %v971_v52 = vld [vmem:[%s1561_s19 + $0x30] sm:$0xf]  ;;  %v1150_v53 = vld [vmem:[%s1561_s19 + $0x34] sm:$0xf0] }
  0x22   : > { %636 = vmatpush.bf16.msra.mxu1 %v1187_v7  ;;  %1298 = vmatpush.bf16.msra.mxu3 %v1187_v7  ;;  %v1032_v51 = vor.u32 %v1163_v46, %v1029_v47  ;;  %v1035_v54 = vld [vmem:[%s1561_s19 + $0xb0] sm:$0xf]  ;;  %v1166_v55 = vld [vmem:[%s1561_s19 + $0xb4] sm:$0xf0]  ;;  %v1149_v56 = vld [vmem:[%s1561_s19 + $0x34] sm:$0xf]  ;;  %v972_v60 = vor.u32 %v1150_v53, %v971_v52 }
  0x23   : > { %v973_v57 = vld [vmem:[%s1561_s19 + $0x38] sm:$0xf0]  ;;  %v1165_v58 = vld [vmem:[%s1561_s19 + $0xb4] sm:$0xf]  ;;  %v1036_v61 = vor.u32 %v1166_v55, %v1035_v54  ;;  %v979_v0 = vld [vmem:[%s1561_s19 + $0x40] sm:$0xf] }
  0x24   : > { %v1037_v59 = vld [vmem:[%s1561_s19 + $0xb8] sm:$0xf0]  ;;  %v976_v62 = vor.u32 %v1149_v56, %v973_v57  ;;  %v1152_v1 = vld [vmem:[%s1561_s19 + $0x44] sm:$0xf0]  ;;  %v1043_v2 = vld [vmem:[%s1561_s19 + $0xc0] sm:$0xf] }
  0x25   : > { %548 = vmatpush.bf16.msra.mxu0 %v1178_v8  ;;  %1291 = vmatpush.bf16.msra.mxu2 %v1178_v8  ;;  %v1040_v63 = vor.u32 %v1165_v58, %v1037_v59  ;;  %v1168_v3 = vld [vmem:[%s1561_s19 + $0xc4] sm:$0xf0]  ;;  %v1151_v4 = vld [vmem:[%s1561_s19 + $0x44] sm:$0xf]  ;;  %v981_v5 = vld [vmem:[%s1561_s19 + $0x48] sm:$0xf0]  ;;  %v980_v8 = vor.u32 %v1152_v1, %v979_v0 }
  0x26   : > { %637 = vmatpush.bf16.msra.mxu1 %v1186_v9  ;;  %1299 = vmatpush.bf16.msra.mxu3 %v1186_v9  ;;  %v1167_v6 = vld [vmem:[%s1561_s19 + $0xc4] sm:$0xf]  ;;  %v1045_v7 = vld [vmem:[%s1561_s19 + $0xc8] sm:$0xf0]  ;;  %v1044_v9 = vor.u32 %v1168_v3, %v1043_v2  ;;  %v1153_v16 = vld [vmem:[%s1561_s19 + $0x54] sm:$0xf] }
  0x27   : > { %v989_v17 = vld [vmem:[%s1561_s19 + $0x58] sm:$0xf0]  ;;  %v1169_v18 = vld [vmem:[%s1561_s19 + $0xd4] sm:$0xf]  ;;  %v1155_v28 = vld [vmem:[%s1561_s19 + $0x64] sm:$0xf] }
  0x28   : > { %v1053_v19 = vld [vmem:[%s1561_s19 + $0xd8] sm:$0xf0]  ;;  %v992_v22 = vor.u32 %v1153_v16, %v989_v17  ;;  %v997_v29 = vld [vmem:[%s1561_s19 + $0x68] sm:$0xf0]  ;;  %v1171_v30 = vld [vmem:[%s1561_s19 + $0xe4] sm:$0xf] }
  0x29   : > { %549 = vmatpush.bf16.msra.mxu0 %v1177_v10  ;;  %1292 = vmatpush.bf16.msra.mxu2 %v1177_v10  ;;  %v984_v10 = vor.u32 %v1151_v4, %v981_v5  ;;  %v1056_v23 = vor.u32 %v1169_v18, %v1053_v19  ;;  %v1061_v31 = vld [vmem:[%s1561_s19 + $0xe8] sm:$0xf0]  ;;  %v1000_v34 = vor.u32 %v1155_v28, %v997_v29  ;;  %v1157_v40 = vld [vmem:[%s1561_s19 + $0x74] sm:$0xf]  ;;  %v1005_v41 = vld [vmem:[%s1561_s19 + $0x78] sm:$0xf0] }
  0x2a   : > { %638 = vmatpush.bf16.msra.mxu1 %v1185_v11  ;;  %1300 = vmatpush.bf16.msra.mxu3 %v1185_v11  ;;  %v1048_v11 = vor.u32 %v1167_v6, %v1045_v7  ;;  %v1064_v35 = vor.u32 %v1171_v30, %v1061_v31  ;;  %v1173_v42 = vld [vmem:[%s1561_s19 + $0xf4] sm:$0xf]  ;;  %v1069_v43 = vld [vmem:[%s1561_s19 + $0xf8] sm:$0xf0]  ;;  %v1008_v46 = vor.u32 %v1157_v40, %v1005_v41 }
  0x2b   : > { %v1072_v47 = vor.u32 %v1173_v42, %v1069_v43 }
  0x2d   : > { %550 = vmatpush.bf16.msra.mxu0 %v1176_v12  ;;  %1293 = vmatpush.bf16.msra.mxu2 %v1176_v12  ;;  %v987_v12 = vld [vmem:[%s1561_s19 + $0x50] sm:$0xf] }
  0x2e   : > { %639 = vmatpush.bf16.msra.mxu1 %v1184_v13  ;;  %1301 = vmatpush.bf16.msra.mxu3 %v1184_v13  ;;  %v1154_v13 = vld [vmem:[%s1561_s19 + $0x54] sm:$0xf0] }
  0x2f   : > { %v988_v20 = vor.u32 %v1154_v13, %v987_v12 }
  0x31   : > { %551 = vmatpush.bf16.msra.mxu0 %v1175_v14  ;;  %1294 = vmatpush.bf16.msra.mxu2 %v1175_v14  ;;  %v1051_v14 = vld [vmem:[%s1561_s19 + $0xd0] sm:$0xf] }
  0x32   : > { %640 = vmatpush.bf16.msra.mxu1 %v1183_v15  ;;  %1302 = vmatpush.bf16.msra.mxu3 %v1183_v15  ;;  %v1170_v15 = vld [vmem:[%s1561_s19 + $0xd4] sm:$0xf0] }
  0x33   : > { %v1052_v21 = vor.u32 %v1170_v15, %v1051_v14 }
  0x34   : > { %552 = vmatmul.bf16.vlgmr.msra.gmra.mxu0 %v948_v24  ;;  %592 = vmatmul.bf16.vlgmr.msra.gmra.mxu2 %v1012_v25  ;;  %v995_v24 = vld [vmem:[%s1561_s19 + $0x60] sm:$0xf]  ;;  %v1156_v25 = vld [vmem:[%s1561_s19 + $0x64] sm:$0xf0] }
  0x35   : > { %641 = vmatmul.bf16.vlgmr.msra.gmra.mxu1 %v952_v26  ;;  %681 = vmatmul.bf16.vlgmr.msra.gmra.mxu3 %v1016_v27  ;;  %v1059_v26 = vld [vmem:[%s1561_s19 + $0xe0] sm:$0xf]  ;;  %v1172_v27 = vld [vmem:[%s1561_s19 + $0xe4] sm:$0xf0]  ;;  %v996_v32 = vor.u32 %v1156_v25, %v995_v24 }
  0x36   : > { %v1060_v33 = vor.u32 %v1172_v27, %v1059_v26 }
  0x44   : > { %557 = vmatmul.bf16.gmra.mxu0 %v956_v36  ;;  %597 = vmatmul.bf16.gmra.mxu2 %v1020_v37  ;;  %v1003_v36 = vld [vmem:[%s1561_s19 + $0x70] sm:$0xf]  ;;  %v1158_v37 = vld [vmem:[%s1561_s19 + $0x74] sm:$0xf0] }
  0x45   : > { %646 = vmatmul.bf16.gmra.mxu1 %v960_v38  ;;  %686 = vmatmul.bf16.gmra.mxu3 %v1024_v39  ;;  %v1067_v38 = vld [vmem:[%s1561_s19 + $0xf0] sm:$0xf]  ;;  %v1174_v39 = vld [vmem:[%s1561_s19 + $0xf4] sm:$0xf0]  ;;  %v1004_v44 = vor.u32 %v1158_v37, %v1003_v36  ;;  %s834_s19 = sshll.u32 %s831_s10, 4  ;;  %s835_s19 = int_to_ptr.hbm [resolvable:$true] %s834_s19 }
  0x46   : > { %v1068_v45 = vor.u32 %v1174_v39, %v1067_v38  ;;  %s1375_s11 = sshra.s32 %s835_s19, 4  ;;  %s1376_s11 = int_to_ptr.hbm [resolvable:$true] %s1375_s11 }
  0x47   : > { %s1377_s21 = scalar_lea.hbm %s1376_s11, 128  ;;  %p1382_p1 = scmp.lt.s32.totalorder %s1376_s11, %s1736_s3 }
  0x48   : > { %p1378_p12 = scmp.ne.s32.totalorder %s1376_s11, %s1377_s21  ;;  %p1383_p2 = scmp.lt.s32.totalorder %s1381_s27, %s1377_s21 }
  0x4a   : > { %p1379_p13 = pnand %p1378_p12, %p1503_p4  ;;  %p1384_p3 = por %p1383_p2, %p1382_p1 }
  0x4c   : > { %p1380_p0 = pneg %p1379_p13 }
  0x4e   : > { %p1385_p5 = pnand %p1384_p3, %p1380_p0 }
  0x54   : > { %562 = vmatmul.bf16.gmra.mxu0 %v964_v48  ;;  %602 = vmatmul.bf16.gmra.mxu2 %v1028_v49  ;;  %v1639_v49 = vld [vmem:[%s1735_s2] ss:$0 sm:$0xff] }
  0x55   : > { %651 = vmatmul.bf16.gmra.mxu1 %v968_v50  ;;  %691 = vmatmul.bf16.gmra.mxu3 %v1032_v51 }
  0x64   : > { %567 = vmatmul.bf16.gmra.mxu0 %v972_v60  ;;  %607 = vmatmul.bf16.gmra.mxu2 %v1036_v61 }
  0x65   : > { %656 = vmatmul.bf16.gmra.mxu1 %v976_v62  ;;  %696 = vmatmul.bf16.gmra.mxu3 %v1040_v63 }
  0x74   : > { %572 = vmatmul.bf16.gmra.mxu0 %v980_v8  ;;  %612 = vmatmul.bf16.gmra.mxu2 %v1044_v9 }
  0x75   : > { %661 = vmatmul.bf16.gmra.mxu1 %v984_v10  ;;  %701 = vmatmul.bf16.gmra.mxu3 %v1048_v11 }
  0x84   : > { %577 = vmatmul.bf16.gmra.mxu0 %v988_v20  ;;  %617 = vmatmul.bf16.gmra.mxu2 %v1052_v21 }
  0x85   : > { %666 = vmatmul.bf16.gmra.mxu1 %v992_v22  ;;  %706 = vmatmul.bf16.gmra.mxu3 %v1056_v23 }
  0x94   : > { %582 = vmatmul.bf16.gmra.mxu0 %v996_v32  ;;  %622 = vmatmul.bf16.gmra.mxu2 %v1060_v33 }
  0x95   : > { %671 = vmatmul.bf16.gmra.mxu1 %v1000_v34  ;;  %711 = vmatmul.bf16.gmra.mxu3 %v1064_v35 }
  0xa4   : > { %587 = vmatmul.bf16.gmra.mxu0 %v1004_v44  ;;  %627 = vmatmul.bf16.gmra.mxu2 %v1068_v45 }
  0xa5   : > { %676 = vmatmul.bf16.gmra.mxu1 %v1008_v46  ;;  %716 = vmatmul.bf16.gmra.mxu3 %v1072_v47 }
  0xb1   : > { %v553_v48 = vpop.f32.mrf.mxu0 }
  0xb2   : > { %v642_v50 = vpop.f32.mrf.mxu1  ;;  %v554_v51 = vadd.f32 %v1639_v49, %v553_v48 }
  0xb4   : > { %v643_v55 = vadd.f32 %v642_v50, %v554_v51 }
  0xb6   : > { %v722_v60 = vmax.f32 %v643_v55, 0.0 }
  0xb7   : > { %v593_v52 = vpop.f32.mrf.mxu2 }
  0xb8   : > { %v682_v53 = vpop.f32.mrf.mxu3  ;;  %v594_v58 = vadd.f32 %v1639_v49, %v593_v52 }
  0xb9   : > { %v555_v54 = vpop.f32.mrf.mxu0 }
  0xba   : > { %v556_v56 = vadd.f32 %v1639_v49, %v555_v54  ;;  %v644_v57 = vpop.f32.mrf.mxu1  ;;  %v683_v63 = vadd.f32 %v682_v53, %v594_v58 }
  0xbc   : > { %v645_v59 = vadd.f32 %v644_v57, %v556_v56  ;;  %v738_v6 = vmax.f32 %v683_v63, 0.0 }
  0xbe   : > { %v723_v61 = vmax.f32 %v645_v59, 0.0 }
  0xbf   : > { %v595_v62 = vpop.f32.mrf.mxu2 }
  0xc0   : > { %v1195_v0 = vpack.c.bf16 %v723_v61, %v722_v60  ;;  %v596_v1 = vadd.f32 %v1639_v49, %v595_v62  ;;  %v684_v2 = vpop.f32.mrf.mxu3 }
  0xc1   : > { %v558_v3 = vpop.f32.mrf.mxu0 }
  0xc2   : > { %1196 = vst [vmem:[%s1648_s6] sm:$0xff] %v1195_v0   ;;  %v685_v4 = vadd.f32 %v684_v2, %v596_v1  ;;  %v647_v5 = vpop.f32.mrf.mxu1  ;;  %v559_v9 = vadd.f32 %v1639_v49, %v558_v3 }
  0xc4   : > { %v739_v7 = vmax.f32 %v685_v4, 0.0  ;;  %v648_v13 = vadd.f32 %v647_v5, %v559_v9 }
  0xc6   : > { %v1235_v8 = vpack.c.bf16 %v739_v7, %v738_v6  ;;  %v724_v18 = vmax.f32 %v648_v13, 0.0 }
  0xc7   : > { %v598_v10 = vpop.f32.mrf.mxu2 }
  0xc8   : > { %1279 = vst [vmem:[%s1648_s6 + $0x40] sm:$0xff] %v1235_v8   ;;  %v687_v11 = vpop.f32.mrf.mxu3  ;;  %v599_v16 = vadd.f32 %v1639_v49, %v598_v10 }
  0xc9   : > { %v560_v12 = vpop.f32.mrf.mxu0 }
  0xca   : > { %v561_v14 = vadd.f32 %v1639_v49, %v560_v12  ;;  %v649_v15 = vpop.f32.mrf.mxu1  ;;  %v688_v21 = vadd.f32 %v687_v11, %v599_v16 }
  0xcc   : > { %v650_v17 = vadd.f32 %v649_v15, %v561_v14  ;;  %v740_v28 = vmax.f32 %v688_v21, 0.0 }
  0xce   : > { %v725_v19 = vmax.f32 %v650_v17, 0.0 }
  0xcf   : > { %v600_v20 = vpop.f32.mrf.mxu2 }
  0xd0   : > { %v1200_v22 = vpack.c.bf16 %v725_v19, %v724_v18  ;;  %v601_v23 = vadd.f32 %v1639_v49, %v600_v20  ;;  %v689_v24 = vpop.f32.mrf.mxu3 }
  0xd1   : > { %v563_v25 = vpop.f32.mrf.mxu0 }
  0xd2   : > { %1272 = vst [vmem:[%s1648_s6 + $0x8] sm:$0xff] %v1200_v22   ;;  %v690_v26 = vadd.f32 %v689_v24, %v601_v23  ;;  %v652_v27 = vpop.f32.mrf.mxu1  ;;  %v564_v31 = vadd.f32 %v1639_v49, %v563_v25 }
  0xd4   : > { %v741_v29 = vmax.f32 %v690_v26, 0.0  ;;  %v653_v35 = vadd.f32 %v652_v27, %v564_v31 }
  0xd6   : > { %v1240_v30 = vpack.c.bf16 %v741_v29, %v740_v28  ;;  %v726_v40 = vmax.f32 %v653_v35, 0.0 }
  0xd7   : > { %v603_v32 = vpop.f32.mrf.mxu2 }
  0xd8   : > { %1280 = vst [vmem:[%s1648_s6 + $0x48] sm:$0xff] %v1240_v30   ;;  %v692_v33 = vpop.f32.mrf.mxu3  ;;  %v604_v38 = vadd.f32 %v1639_v49, %v603_v32 }
  0xd9   : > { %v565_v34 = vpop.f32.mrf.mxu0 }
  0xda   : > { %v566_v36 = vadd.f32 %v1639_v49, %v565_v34  ;;  %v654_v37 = vpop.f32.mrf.mxu1  ;;  %v693_v43 = vadd.f32 %v692_v33, %v604_v38 }
  0xdc   : > { %v655_v39 = vadd.f32 %v654_v37, %v566_v36  ;;  %v742_v51 = vmax.f32 %v693_v43, 0.0 }
  0xde   : > { %v727_v41 = vmax.f32 %v655_v39, 0.0 }
  0xdf   : > { %v605_v42 = vpop.f32.mrf.mxu2 }
  0xe0   : > { %v1205_v44 = vpack.c.bf16 %v727_v41, %v726_v40  ;;  %v606_v45 = vadd.f32 %v1639_v49, %v605_v42  ;;  %v694_v46 = vpop.f32.mrf.mxu3 }
  0xe1   : > { %v568_v47 = vpop.f32.mrf.mxu0 }
  0xe2   : > { %1273 = vst [vmem:[%s1648_s6 + $0x10] sm:$0xff] %v1205_v44   ;;  %v695_v48 = vadd.f32 %v694_v46, %v606_v45  ;;  %v657_v50 = vpop.f32.mrf.mxu1  ;;  %v569_v54 = vadd.f32 %v1639_v49, %v568_v47 }
  0xe4   : > { %v743_v52 = vmax.f32 %v695_v48, 0.0  ;;  %v658_v58 = vadd.f32 %v657_v50, %v569_v54 }
  0xe6   : > { %v1245_v53 = vpack.c.bf16 %v743_v52, %v742_v51  ;;  %v728_v63 = vmax.f32 %v658_v58, 0.0 }
  0xe7   : > { %v608_v55 = vpop.f32.mrf.mxu2 }
  0xe8   : > { %1281 = vst [vmem:[%s1648_s6 + $0x50] sm:$0xff] %v1245_v53   ;;  %v697_v56 = vpop.f32.mrf.mxu3  ;;  %v609_v61 = vadd.f32 %v1639_v49, %v608_v55 }
  0xe9   : > { %v570_v57 = vpop.f32.mrf.mxu0 }
  0xea   : > { %v571_v59 = vadd.f32 %v1639_v49, %v570_v57  ;;  %v659_v60 = vpop.f32.mrf.mxu1  ;;  %v698_v2 = vadd.f32 %v697_v56, %v609_v61 }
  0xec   : > { %v660_v62 = vadd.f32 %v659_v60, %v571_v59  ;;  %v744_v9 = vmax.f32 %v698_v2, 0.0 }
  0xee   : > { %v729_v0 = vmax.f32 %v660_v62, 0.0 }
  0xef   : > { %v610_v1 = vpop.f32.mrf.mxu2 }
  0xf0   : > { %v1210_v3 = vpack.c.bf16 %v729_v0, %v728_v63  ;;  %v611_v4 = vadd.f32 %v1639_v49, %v610_v1  ;;  %v699_v5 = vpop.f32.mrf.mxu3 }
  0xf1   : > { %v573_v6 = vpop.f32.mrf.mxu0 }
  0xf2   : > { %1274 = vst [vmem:[%s1648_s6 + $0x18] sm:$0xff] %v1210_v3   ;;  %v700_v7 = vadd.f32 %v699_v5, %v611_v4  ;;  %v662_v8 = vpop.f32.mrf.mxu1  ;;  %v574_v12 = vadd.f32 %v1639_v49, %v573_v6 }
  0xf4   : > { %v745_v10 = vmax.f32 %v700_v7, 0.0  ;;  %v663_v16 = vadd.f32 %v662_v8, %v574_v12 }
  0xf6   : > { %v1250_v11 = vpack.c.bf16 %v745_v10, %v744_v9  ;;  %v730_v21 = vmax.f32 %v663_v16, 0.0 }
  0xf7   : > { %v613_v13 = vpop.f32.mrf.mxu2 }
  0xf8   : > { %1282 = vst [vmem:[%s1648_s6 + $0x58] sm:$0xff] %v1250_v11   ;;  %v702_v14 = vpop.f32.mrf.mxu3  ;;  %v614_v19 = vadd.f32 %v1639_v49, %v613_v13 }
  0xf9   : > { %v575_v15 = vpop.f32.mrf.mxu0 }
  0xfa   : > { %v576_v17 = vadd.f32 %v1639_v49, %v575_v15  ;;  %v664_v18 = vpop.f32.mrf.mxu1  ;;  %v703_v24 = vadd.f32 %v702_v14, %v614_v19 }
  0xfc   : > { %v665_v20 = vadd.f32 %v664_v18, %v576_v17  ;;  %v746_v31 = vmax.f32 %v703_v24, 0.0 }
  0xfe   : > { %v731_v22 = vmax.f32 %v665_v20, 0.0 }
  0xff   : > { %v615_v23 = vpop.f32.mrf.mxu2 }
 0x100   : > { %v1215_v25 = vpack.c.bf16 %v731_v22, %v730_v21  ;;  %v616_v26 = vadd.f32 %v1639_v49, %v615_v23  ;;  %v704_v27 = vpop.f32.mrf.mxu3 }
 0x101   : > { %v578_v28 = vpop.f32.mrf.mxu0 }
 0x102   : > { %1275 = vst [vmem:[%s1648_s6 + $0x20] sm:$0xff] %v1215_v25   ;;  %v705_v29 = vadd.f32 %v704_v27, %v616_v26  ;;  %v667_v30 = vpop.f32.mrf.mxu1  ;;  %v579_v34 = vadd.f32 %v1639_v49, %v578_v28 }
 0x104   : > { %v747_v32 = vmax.f32 %v705_v29, 0.0  ;;  %v668_v38 = vadd.f32 %v667_v30, %v579_v34 }
 0x106   : > { %v1255_v33 = vpack.c.bf16 %v747_v32, %v746_v31  ;;  %v732_v43 = vmax.f32 %v668_v38, 0.0 }
 0x107   : > { %v618_v35 = vpop.f32.mrf.mxu2 }
 0x108   : > { %1283 = vst [vmem:[%s1648_s6 + $0x60] sm:$0xff] %v1255_v33   ;;  %v707_v36 = vpop.f32.mrf.mxu3  ;;  %v619_v41 = vadd.f32 %v1639_v49, %v618_v35 }
 0x109   : > { %v580_v37 = vpop.f32.mrf.mxu0 }
 0x10a   : > { %v581_v39 = vadd.f32 %v1639_v49, %v580_v37  ;;  %v669_v40 = vpop.f32.mrf.mxu1  ;;  %v708_v46 = vadd.f32 %v707_v36, %v619_v41 }
 0x10c   : > { %v670_v42 = vadd.f32 %v669_v40, %v581_v39  ;;  %v748_v54 = vmax.f32 %v708_v46, 0.0 }
 0x10e   : > { %v733_v44 = vmax.f32 %v670_v42, 0.0 }
 0x10f   : > { %v620_v45 = vpop.f32.mrf.mxu2 }
 0x110   : > { %v1220_v47 = vpack.c.bf16 %v733_v44, %v732_v43  ;;  %v621_v48 = vadd.f32 %v1639_v49, %v620_v45  ;;  %v709_v50 = vpop.f32.mrf.mxu3 }
 0x111   : > { %v583_v51 = vpop.f32.mrf.mxu0 }
 0x112   : > { %1276 = vst [vmem:[%s1648_s6 + $0x28] sm:$0xff] %v1220_v47   ;;  %v710_v52 = vadd.f32 %v709_v50, %v621_v48  ;;  %v672_v53 = vpop.f32.mrf.mxu1  ;;  %v584_v57 = vadd.f32 %v1639_v49, %v583_v51 }
 0x114   : > { %v749_v55 = vmax.f32 %v710_v52, 0.0  ;;  %v673_v61 = vadd.f32 %v672_v53, %v584_v57 }
 0x116   : > { %v1260_v56 = vpack.c.bf16 %v749_v55, %v748_v54  ;;  %v734_v2 = vmax.f32 %v673_v61, 0.0 }
 0x117   : > { %v623_v58 = vpop.f32.mrf.mxu2 }
 0x118   : > { %1284 = vst [vmem:[%s1648_s6 + $0x68] sm:$0xff] %v1260_v56   ;;  %v712_v59 = vpop.f32.mrf.mxu3  ;;  %v624_v0 = vadd.f32 %v1639_v49, %v623_v58 }
 0x119   : > { %v585_v60 = vpop.f32.mrf.mxu0 }
 0x11a   : > { %v586_v62 = vadd.f32 %v1639_v49, %v585_v60  ;;  %v674_v63 = vpop.f32.mrf.mxu1  ;;  %v713_v5 = vadd.f32 %v712_v59, %v624_v0 }
 0x11c   : > { %v675_v1 = vadd.f32 %v674_v63, %v586_v62  ;;  %v750_v12 = vmax.f32 %v713_v5, 0.0 }
 0x11e   : > { %v735_v3 = vmax.f32 %v675_v1, 0.0 }
 0x11f   : > { %v625_v4 = vpop.f32.mrf.mxu2 }
 0x120   : > { %v1225_v6 = vpack.c.bf16 %v735_v3, %v734_v2  ;;  %v626_v7 = vadd.f32 %v1639_v49, %v625_v4  ;;  %v714_v8 = vpop.f32.mrf.mxu3 }
 0x121   : > { %v588_v9 = vpop.f32.mrf.mxu0 }
 0x122   : > { %1277 = vst [vmem:[%s1648_s6 + $0x30] sm:$0xff] %v1225_v6   ;;  %v715_v10 = vadd.f32 %v714_v8, %v626_v7  ;;  %v677_v11 = vpop.f32.mrf.mxu1  ;;  %v589_v15 = vadd.f32 %v1639_v49, %v588_v9 }
 0x124   : > { %v751_v13 = vmax.f32 %v715_v10, 0.0  ;;  %v678_v19 = vadd.f32 %v677_v11, %v589_v15 }
 0x126   : > { %v1265_v14 = vpack.c.bf16 %v751_v13, %v750_v12  ;;  %v736_v24 = vmax.f32 %v678_v19, 0.0 }
 0x127   : > { %v628_v16 = vpop.f32.mrf.mxu2 }
 0x128   : > { %1285 = vst [vmem:[%s1648_s6 + $0x70] sm:$0xff] %v1265_v14   ;;  %v717_v17 = vpop.f32.mrf.mxu3  ;;  %v629_v22 = vadd.f32 %v1639_v49, %v628_v16 }
 0x129   : > { %v590_v18 = vpop.f32.mrf.mxu0 }
 0x12a   : > { %v591_v20 = vadd.f32 %v1639_v49, %v590_v18  ;;  %v679_v21 = vpop.f32.mrf.mxu1  ;;  %v718_v27 = vadd.f32 %v717_v17, %v629_v22 }
 0x12c   : > { %v680_v23 = vadd.f32 %v679_v21, %v591_v20  ;;  %v752_v32 = vmax.f32 %v718_v27, 0.0 }
 0x12e   : > { %v737_v25 = vmax.f32 %v680_v23, 0.0 }
 0x12f   : > { %v630_v26 = vpop.f32.mrf.mxu2 }
 0x130   : > { %v1230_v28 = vpack.c.bf16 %v737_v25, %v736_v24  ;;  %v631_v29 = vadd.f32 %v1639_v49, %v630_v26  ;;  %v719_v30 = vpop.f32.mrf.mxu3 }
 0x132   : > { %1278 = vst [vmem:[%s1648_s6 + $0x38] sm:$0xff] %v1230_v28   ;;  %v720_v31 = vadd.f32 %v719_v30, %v631_v29 }
 0x134   : > { %v753_v33 = vmax.f32 %v720_v31, 0.0 }
 0x136   : > { %v1270_v34 = vpack.c.bf16 %v753_v33, %v752_v32 }
 0x138   : > { %1286 = vst [vmem:[%s1648_s6 + $0x78] sm:$0xff] %v1270_v34  }
 0x139   : > { %1388 = shalt.err (!%p1385_p5)
}
 0x13a   : > { %s1441_s30 = smov 64   ;;  %s1442_s4 = smov 4  }
 0x13b   : > { %1303 = dma.vmem_to_hbm [thread:$0]  (%p1503_p4), %s833_s18, 2048, %s835_s19, %s819_s15, %s1441_s30, %s1441_s30, %s1442_s4  }
 0x13c PF: > { %p1309_p6 = scmp.ge.s32.totalorder %s1439_s17, 2  ;;  %s849_s5 = sand.u32 1, %s1419_s12  }
 0x13d   : > { %s850_s6 = scalar_lea.sflag [#allocation3], %s849_s5 }
 0x13e   : > { %p1306_p7 = pnand %p1309_p6, %p1510_p8 }
 0x140   : > { %p1307_p9 = pneg %p1306_p7 }
 0x142   : > { %1414 = dma.done.wait (%p1307_p9), %s850_s6, 2048  }
 0x143   : > { %1416 = vsyncadd (%p1307_p9), %s850_s6, 4294965248  ;;  %s16_s17 = sadd.s32 1, %s1439_s17   ;;  %s1739_s12 = smov %s1423_s13 }
 0x144   : > { %p13_p10 = scmp.ge.s32.totalorder %s16_s17, 10   ;;  %s1740_s13 = smov %s1427_s14 }
 0x145   : > { %s1741_s14 = smov %s1516_s25  ;;  %s1742_s15 = smov %s1435_s16 }
 0x146   : > { %s1743_s16 = smov %s1745_s20  ;;  %15 = sbr.rel (!%p13_p10) target bundleno = 4 (0x4), region = 73 }
 0x14b   :  { %856 = vsyncpa [#allocation3], 1 }
 0x14c   :  { %858 = vsyncpa [#allocation3 + $0x1], 1 }

</bundles_post_ra>
